<compile_context>
chip_gen: v5e
topology: v5e:2x2
jax: 0.10.0
libtpu: 0.0.40
codegen_flags: <defaults>
</compile_context>

<pallas_src>
import jax
import jax.numpy as jnp
from jax.experimental import pallas as pl
from jax.experimental.pallas import tpu as pltpu


_ACTIVATIONS = {
    "relu": lambda h: jnp.maximum(h, 0.0),
    "leaky_relu": lambda h: jnp.where(h > 0, h, 0.01 * h),   # PyTorch default slope
    "sigmoid": jax.nn.sigmoid,
    "tanh": jnp.tanh,
}


def _round_up(v, m):
    return (v + m - 1) // m * m


def _vmem_capacity_bytes():
    """Per-generation VMEM capacity; conservative 64 MiB (v7x per-TC) fallback."""
    try:
        info = pltpu.get_tpu_info()
        cap = getattr(info, "vmem_capacity_bytes", None)
        if cap:
            return int(cap)
    except Exception:
        pass
    return 64 << 20


# ---------------------------------------------------------------------------
# Kernel
# ---------------------------------------------------------------------------
def make_ann_kernel(n_linear: int, activation: str = "relu"):
    """Builds a fused MLP(+softmax) kernel body for `n_linear` Linear layers."""
    act = _ACTIVATIONS[activation]

    def kernel(*refs):
        # refs = (x_ref, w1_ref, b1_ref, ..., wL_ref, bL_ref, out_ref)
        x_ref = refs[0]
        out_ref = refs[-1]

        h = x_ref[...]                                   # bf16, feeds the MXU directly
        for l in range(n_linear):
            w_ref = refs[1 + 2 * l]                      # bf16, (in_p, out_p)
            b_ref = refs[2 + 2 * l]                      # f32,  (1, out_p)
            # bf16 operands on the MXU, f32 accumulation; bias add in f32.
            h = jnp.dot(h, w_ref[...],
                        preferred_element_type=jnp.float32) + b_ref[...]
            if l < n_linear - 1:                         # activation after hidden Linears only
                h = act(h).astype(jnp.bfloat16)          # bf16 operand for the next matmul

        # Numerically stable softmax over the (lane-dense, padded) class axis.
        # Padded class lanes carry f32 bias -1e30 -> exp underflows to exactly 0,
        # so the softmax over the real classes is unchanged.
        m = jnp.max(h, axis=-1, keepdims=True)
        e = jnp.exp(h - m)
        inv = pl.reciprocal(jnp.sum(e, axis=-1, keepdims=True), approx=True)
        out_ref[...] = (e * inv).astype(out_ref.dtype)   # bf16 lane-dense store

    return kernel


# ---------------------------------------------------------------------------
# Wrapper
# ---------------------------------------------------------------------------
def ann_forward(x, params, *, activation="relu", block_batch=1024):
    """params: list of (W, b) with W shaped (in_features, out_features), b shaped (1, out_features)."""
    assert activation in _ACTIVATIONS, f"unknown activation {activation}"
    B, in_dim = x.shape
    n_linear = len(params)
    n_class = params[-1][0].shape[1]

    # ---- pad every layer's output width to a lane-dense multiple of 128 ------
    out_dims = [w.shape[1] for w, _ in params]
    out_dims_p = [_round_up(d, 128) for d in out_dims]
    in_dims = [in_dim] + out_dims[:-1]
    in_dims_p = [in_dim] + out_dims_p[:-1]

    padded_params = []
    for l, (w, b) in enumerate(params):
        w = jnp.asarray(w, jnp.float32)
        b = jnp.asarray(b, jnp.float32).reshape(1, -1)
        pad_in = in_dims_p[l] - in_dims[l]
        pad_out = out_dims_p[l] - out_dims[l]
        if pad_in or pad_out:
            w = jnp.pad(w, ((0, pad_in), (0, pad_out)))
            # Hidden layers: zero bias in padded lanes (act(0)=0, next layer's padded
            # input rows are zero). Final layer: -1e30 (stays f32) -> exp == 0.
            pad_val = -1e30 if l == n_linear - 1 else 0.0
            b = jnp.pad(b, ((0, 0), (0, pad_out)), constant_values=pad_val)
        padded_params.append((w.astype(jnp.bfloat16), b))   # bf16 MXU weight, f32 bias

    n_class_p = out_dims_p[-1]
    max_width_p = max(out_dims_p)

    # ---- per-generation VMEM budgeting ---------------------------------------
    vmem_cap = _vmem_capacity_bytes()
    budget = (vmem_cap * 3) // 4                    # leave headroom below physical
    param_bytes = sum(w.size * 2 + b.size * 4 for w, b in padded_params)
    if param_bytes > budget // 2:
        # TODO(synk): fall back to an (M,N,K)-tiled grid with an 'arbitrary' reduction
        # axis + VMEM accumulator when the weights do not fit VMEM-resident.
        raise NotImplementedError("weights too large for whole-array VMEM residency")

    # Bytes that scale with the batch-tile height: double-buffered bf16 x and bf16 out,
    # plus ~3 live f32 intermediates at the widest (padded) layer.
    per_row = 2 * in_dim * 2 + 2 * n_class_p * 2 + 3 * max_width_p * 4
    bb_vmem = max(16, ((budget - param_bytes) // per_row) // 16 * 16)

    # ---- batch tiling (16-aligned tiles for bf16 sublane packing) ------------
    B16 = _round_up(B, 16)
    bb = max(16, min(_round_up(block_batch, 16), bb_vmem, B16))
    # Keep >= 2 "parallel" grid steps when the batch is big enough so both v7x
    # TensorCores get work (v5e/v6e have 1 TC and are unaffected).
    MIN_TILE = 256
    if B16 >= 2 * MIN_TILE:
        bb = min(bb, _round_up(pl.cdiv(B16, 2), 16))
    bb = max(16, bb - bb % 16)
    Bp = _round_up(B, bb)
    grid = (Bp // bb,)

    x = jnp.asarray(x, jnp.float32)
    if Bp != B:
        x = jnp.pad(x, ((0, Bp - B), (0, 0)))
    x = x.astype(jnp.bfloat16)                      # stream x in bf16

    flat_params = []
    for w, b in padded_params:
        flat_params.extend((w, b))

    in_specs = [pl.BlockSpec((bb, in_dim), lambda i: (i, 0))]
    # whole-array, un-pipelined VMEM residency for the small weights / biases
    in_specs += [pl.BlockSpec(memory_space=pltpu.MemorySpace.VMEM)
                 for _ in flat_params]
    out_spec = pl.BlockSpec((bb, n_class_p), lambda i: (i, 0))

    # ---- advisory cost estimate (bf16 x, bf16 out) ---------------------------
    dims_p = [in_dim] + out_dims_p
    flops = 2 * Bp * sum(dims_p[i] * dims_p[i + 1] for i in range(n_linear))
    transc = Bp * n_class_p                          # softmax exp
    if activation in ("sigmoid", "tanh"):
        transc += Bp * sum(out_dims_p[:-1])
    bytes_accessed = x.size * 2 + param_bytes + Bp * n_class_p * 2
    cost = pl.CostEstimate(flops=flops, transcendentals=transc,
                           bytes_accessed=bytes_accessed)

    # ---- explicit scoped-VMEM limit derived from the actual buffers ----------
    vmem_needed = param_bytes + bb * per_row
    vmem_limit = int(min(budget, max(32 << 20, 2 * vmem_needed + (4 << 20))))

    out_padded = pl.pallas_call(
        make_ann_kernel(n_linear, activation),
        out_shape=jax.ShapeDtypeStruct((Bp, n_class_p), jnp.bfloat16),
        grid=grid,
        in_specs=in_specs,
        out_specs=out_spec,
        compiler_params=pltpu.CompilerParams(
            dimension_semantics=("parallel",),
            vmem_limit_bytes=vmem_limit),
        cost_estimate=cost,
    )(x, *flat_params)

    return out_padded[:B, :n_class].astype(jnp.float32)


# ---------------------------------------------------------------------------
# Deterministic parameter init (PyTorch nn.Linear default: U(-1/sqrt(fan_in), 1/sqrt(fan_in)))
# ---------------------------------------------------------------------------
def init_ann_params(key, input_dim, hidden_layers, n_class):
    dims = [input_dim] + list(hidden_layers) + [n_class]
    params = []
    for i in range(len(dims) - 1):
        fan_in, fan_out = dims[i], dims[i + 1]
        key, kw, kb = jax.random.split(key, 3)
        bound = 1.0 / jnp.sqrt(jnp.float32(fan_in))
        w = jax.random.uniform(kw, (fan_in, fan_out), jnp.float32, -bound, bound)
        b = jax.random.uniform(kb, (1, fan_out), jnp.float32, -bound, bound)
        params.append((w, b))
    return params


def ann_forward_reference(x, params, activation="relu"):
    act = _ACTIVATIONS[activation]
    h = x.astype(jnp.float32)
    for i, (w, b) in enumerate(params):
        h = h @ w + b
        if i < len(params) - 1:
            h = act(h)
    return jax.nn.softmax(h, axis=-1)


# ---------------------------------------------------------------------------
# Main
# ---------------------------------------------------------------------------
if __name__ == "__main__":
    # Small shapes consistent with the module: input_dim=16, hidden_layers=[32, 32], n_class=2.
    # batch=50 with block_batch=32 exercises batch padding (50 -> 64) and a 2-step parallel grid.
    batch, input_dim, hidden_layers, n_class = 50, 16, [32, 32], 2
    activation = "relu"

    key = jax.random.PRNGKey(0)
    key, kx = jax.random.split(key)
    x = jax.random.normal(kx, (batch, input_dim), jnp.float32)

    params = init_ann_params(key, input_dim, hidden_layers, n_class)

    out = ann_forward(x, params, activation=activation, block_batch=32)
    out = jax.block_until_ready(out)

    ref = ann_forward_reference(x, params, activation=activation)
    assert out.shape == (batch, n_class)
    # bf16 inputs/weights/activations/output + approx reciprocal -> loose tolerance vs f32 ref.
    assert bool(jnp.allclose(out, ref, atol=5e-2, rtol=5e-2))
    # probabilities sum to ~1 along the class axis (approx reciprocal + bf16 output)
    assert bool(jnp.allclose(jnp.sum(out, axis=-1), jnp.ones((batch,)), atol=3e-2))

    print("KERNEL_OK")
</pallas_src>

<mosaic_0001>
module attributes {stable_mosaic.version = 11 : i64} {
  func.func @kernel(%arg0: i32, %arg1: memref<32x16xbf16, #tpu.memory_space<vmem>>, %arg2: memref<16x128xbf16, #tpu.memory_space<vmem>>, %arg3: memref<1x128xf32, #tpu.memory_space<vmem>>, %arg4: memref<128x128xbf16, #tpu.memory_space<vmem>>, %arg5: memref<1x128xf32, #tpu.memory_space<vmem>>, %arg6: memref<128x128xbf16, #tpu.memory_space<vmem>>, %arg7: memref<1x128xf32, #tpu.memory_space<vmem>>, %arg8: memref<32x128xbf16, #tpu.memory_space<vmem>>) attributes {dimension_semantics = [#tpu.dimension_semantics<parallel>], iteration_bounds = array<i64: 2>, scalar_prefetch = 0 : i64, scratch_operands = 0 : i64, tpu.core_type = #tpu.core_type<tc>, window_params = [{transform_indices = @transform_0, window_bounds = array<i64: 32, 16>}, {pipeline_mode = #tpu.pipeline_mode<synchronous>, transform_indices = @transform_1, window_bounds = array<i64: 16, 128>}, {pipeline_mode = #tpu.pipeline_mode<synchronous>, transform_indices = @transform_2, window_bounds = array<i64: 1, 128>}, {pipeline_mode = #tpu.pipeline_mode<synchronous>, transform_indices = @transform_3, window_bounds = array<i64: 128, 128>}, {pipeline_mode = #tpu.pipeline_mode<synchronous>, transform_indices = @transform_4, window_bounds = array<i64: 1, 128>}, {pipeline_mode = #tpu.pipeline_mode<synchronous>, transform_indices = @transform_5, window_bounds = array<i64: 128, 128>}, {pipeline_mode = #tpu.pipeline_mode<synchronous>, transform_indices = @transform_6, window_bounds = array<i64: 1, 128>}, {transform_indices = @transform_7, window_bounds = array<i64: 32, 128>}]} {
    %c0 = arith.constant 0 : index
    %c0_0 = arith.constant 0 : index
    %0 = vector.load %arg1[%c0, %c0_0] : memref<32x16xbf16, #tpu.memory_space<vmem>>, vector<32x16xbf16>
    %c0_1 = arith.constant 0 : index
    %c0_2 = arith.constant 0 : index
    %1 = vector.load %arg2[%c0_1, %c0_2] : memref<16x128xbf16, #tpu.memory_space<vmem>>, vector<16x128xbf16>
    %cst = arith.constant dense<0.000000e+00> : vector<32x128xf32>
    %2 = tpu.matmul %0, %1, %cst {dimension_numbers = #tpu.dot_dimension_numbers<[1], [0], [0], [1], [0, 0, 1, 1], [], []>} : vector<32x16xbf16>, vector<16x128xbf16>, vector<32x128xf32> -> vector<32x128xf32>
    %c0_3 = arith.constant 0 : index
    %c0_4 = arith.constant 0 : index
    %3 = vector.load %arg3[%c0_3, %c0_4] : memref<1x128xf32, #tpu.memory_space<vmem>>, vector<1x128xf32>
    %4 = vector.broadcast %3 : vector<1x128xf32> to vector<32x128xf32>
    %5 = arith.addf %2, %4 : vector<32x128xf32>
    %cst_5 = arith.constant 0.000000e+00 : f32
    %6 = vector.broadcast %cst_5 : f32 to vector<32x128xf32>
    %7 = arith.maximumf %5, %6 : vector<32x128xf32>
    %8 = arith.truncf %7 : vector<32x128xf32> to vector<32x128xbf16>
    %c0_6 = arith.constant 0 : index
    %c0_7 = arith.constant 0 : index
    %9 = vector.load %arg4[%c0_6, %c0_7] : memref<128x128xbf16, #tpu.memory_space<vmem>>, vector<128x128xbf16>
    %cst_8 = arith.constant dense<0.000000e+00> : vector<32x128xf32>
    %10 = tpu.matmul %8, %9, %cst_8 {dimension_numbers = #tpu.dot_dimension_numbers<[1], [0], [0], [1], [0, 0, 1, 1], [], []>} : vector<32x128xbf16>, vector<128x128xbf16>, vector<32x128xf32> -> vector<32x128xf32>
    %c0_9 = arith.constant 0 : index
    %c0_10 = arith.constant 0 : index
    %11 = vector.load %arg5[%c0_9, %c0_10] : memref<1x128xf32, #tpu.memory_space<vmem>>, vector<1x128xf32>
    %12 = vector.broadcast %11 : vector<1x128xf32> to vector<32x128xf32>
    %13 = arith.addf %10, %12 : vector<32x128xf32>
    %cst_11 = arith.constant 0.000000e+00 : f32
    %14 = vector.broadcast %cst_11 : f32 to vector<32x128xf32>
    %15 = arith.maximumf %13, %14 : vector<32x128xf32>
    %16 = arith.truncf %15 : vector<32x128xf32> to vector<32x128xbf16>
    %c0_12 = arith.constant 0 : index
    %c0_13 = arith.constant 0 : index
    %17 = vector.load %arg6[%c0_12, %c0_13] : memref<128x128xbf16, #tpu.memory_space<vmem>>, vector<128x128xbf16>
    %cst_14 = arith.constant dense<0.000000e+00> : vector<32x128xf32>
    %18 = tpu.matmul %16, %17, %cst_14 {dimension_numbers = #tpu.dot_dimension_numbers<[1], [0], [0], [1], [0, 0, 1, 1], [], []>} : vector<32x128xbf16>, vector<128x128xbf16>, vector<32x128xf32> -> vector<32x128xf32>
    %c0_15 = arith.constant 0 : index
    %c0_16 = arith.constant 0 : index
    %19 = vector.load %arg7[%c0_15, %c0_16] : memref<1x128xf32, #tpu.memory_space<vmem>>, vector<1x128xf32>
    %20 = vector.broadcast %19 : vector<1x128xf32> to vector<32x128xf32>
    %21 = arith.addf %18, %20 : vector<32x128xf32>
    %cst_17 = arith.constant dense<0xFF800000> : vector<32xf32>
    %22 = vector.multi_reduction <maximumf>, %21, %cst_17 [1] : vector<32x128xf32> to vector<32xf32>
    %23 = vector.shape_cast %22 : vector<32xf32> to vector<32x1xf32>
    %24 = vector.broadcast %23 : vector<32x1xf32> to vector<32x128xf32>
    %25 = arith.subf %21, %24 : vector<32x128xf32>
    %26 = math.exp %25 : vector<32x128xf32>
    %cst_18 = arith.constant dense<0.000000e+00> : vector<32xf32>
    %27 = vector.multi_reduction <add>, %26, %cst_18 [1] : vector<32x128xf32> to vector<32xf32>
    %28 = vector.shape_cast %27 : vector<32xf32> to vector<32x1xf32>
    %29 = tpu.reciprocal %28 {approx = true} : vector<32x1xf32> -> vector<32x1xf32>
    %30 = vector.broadcast %29 : vector<32x1xf32> to vector<32x128xf32>
    %31 = arith.mulf %26, %30 : vector<32x128xf32>
    %32 = arith.truncf %31 : vector<32x128xf32> to vector<32x128xbf16>
    %c0_19 = arith.constant 0 : index
    %c0_20 = arith.constant 0 : index
    %33 = vector.load %arg8[%c0_19, %c0_20] : memref<32x128xbf16, #tpu.memory_space<vmem>>, vector<32x128xbf16>
    tpu.vector_store %arg8[%c0_19, %c0_20], %32 {strides = array<i32>} : memref<32x128xbf16, #tpu.memory_space<vmem>>, vector<32x128xbf16>,
    return
  }
  func.func @transform_0(%arg0: i32) -> (i32, i32) {
    %c0_i32 = arith.constant 0 : i32
    %c0_i32_0 = arith.constant 0 : i32
    return %arg0, %c0_i32 : i32, i32
  }
  func.func @transform_1(%arg0: i32) -> (i32, i32) {
    %c0_i32 = arith.constant 0 : i32
    %c0_i32_0 = arith.constant 0 : i32
    %c0_i32_1 = arith.constant 0 : i32
    return %c0_i32, %c0_i32_0 : i32, i32
  }
  func.func @transform_2(%arg0: i32) -> (i32, i32) {
    %c0_i32 = arith.constant 0 : i32
    %c0_i32_0 = arith.constant 0 : i32
    %c0_i32_1 = arith.constant 0 : i32
    return %c0_i32, %c0_i32_0 : i32, i32
  }
  func.func @transform_3(%arg0: i32) -> (i32, i32) {
    %c0_i32 = arith.constant 0 : i32
    %c0_i32_0 = arith.constant 0 : i32
    %c0_i32_1 = arith.constant 0 : i32
    return %c0_i32, %c0_i32_0 : i32, i32
  }
  func.func @transform_4(%arg0: i32) -> (i32, i32) {
    %c0_i32 = arith.constant 0 : i32
    %c0_i32_0 = arith.constant 0 : i32
    %c0_i32_1 = arith.constant 0 : i32
    return %c0_i32, %c0_i32_0 : i32, i32
  }
  func.func @transform_5(%arg0: i32) -> (i32, i32) {
    %c0_i32 = arith.constant 0 : i32
    %c0_i32_0 = arith.constant 0 : i32
    %c0_i32_1 = arith.constant 0 : i32
    return %c0_i32, %c0_i32_0 : i32, i32
  }
  func.func @transform_6(%arg0: i32) -> (i32, i32) {
    %c0_i32 = arith.constant 0 : i32
    %c0_i32_0 = arith.constant 0 : i32
    %c0_i32_1 = arith.constant 0 : i32
    return %c0_i32, %c0_i32_0 : i32, i32
  }
  func.func @transform_7(%arg0: i32) -> (i32, i32) {
    %c0_i32 = arith.constant 0 : i32
    %c0_i32_0 = arith.constant 0 : i32
    return %arg0, %c0_i32 : i32, i32
  }
}

</mosaic_0001>

<bundles_post_ra>
// kernel: tpu_custom_call.1
= control target key start
LH: loop header
LB: loop body
LE: loop exit
PB: predicated region body
PF: predicated region fallthrough
CT: control target
= control target key end

     0   :  { %12 = vsyncpa [#allocation3], 0  ;;  %s1220_s0 = inlined_call_operand.vmem [shape: bf16[64,16], index: 0, kind: input, shape index: {}]   ;;  %s1221_s1 = inlined_call_operand.vmem [shape: bf16[16,128], index: 1, kind: input, shape index: {}]   ;;  %s1222_s2 = inlined_call_operand.vmem [shape: f32[1,128], index: 2, kind: input, shape index: {}]   ;;  %s1223_s3 = inlined_call_operand.hbm [shape: bf16[128,128], index: 3, kind: input, shape index: {}]   ;;  %s1224_s4 = inlined_call_operand.vmem [shape: f32[1,128], index: 4, kind: input, shape index: {}]   ;;  %s1225_s5 = inlined_call_operand.hbm [shape: bf16[128,128], index: 5, kind: input, shape index: {}]   ;;  %s1226_s6 = inlined_call_operand.vmem [shape: f32[1,128], index: 6, kind: input, shape index: {}]   ;;  %s1227_s7 = inlined_call_operand.hbm [shape: bf16[64,128], index: 7, kind: output, shape index: {}]  }
   0x1   :  { %13 = vsyncpa [#allocation6], 0 }
   0x2   :  { %14 = vsyncpa [#allocation4], 0 }
   0x3   :  { %16 = vsyncpa [#allocation4 + $0x1], 0  ;;  %s1099_s24 = smov 0   ;;  %s1101_s25 = smov 0  }
   0x4   :  { %s1103_s26 = smov 0   ;;  %s1105_s27 = smov 0  }
   0x5 LB: > { %s1120_s28 = sadd.s32 4294967295, %s1051_s27   ;;  %s697_s29 = sadd.s32 4294967294, %s1051_s27   ;;  %s1051_s27 = sphi %s1105_s27, %s1234_s27   ;;  %s1047_s26 = sphi %s1103_s26, %s1233_s26   ;;  %s1043_s25 = sphi %s1101_s25, %s1232_s25   ;;  %s1039_s24 = sphi %s1099_s24, %s1231_s24  }
   0x6   : > { %s1124_s30 = sadd.s32 1, %s1051_s27   ;;  %s181_s8 = sadd.s32 1, %s1047_s26 }
   0x7   : > { %s178_s9 = ssub.s32 %s1051_s27, %s1124_s30  ;;  %p191_p0 = scmp.ne.s32.totalorder %s1047_s26, %s1043_s25 }
   0x8   : > { %p179_p1 = scmp.eq.s32.totalorder %s178_s9, 0  ;;  %p192_p2 = scmp.eq.s32.totalorder %s1120_s28, 1 }
   0x9   : > { %p197_p3 = scmp.ne.s32.totalorder %s1043_s25, %s1039_s24  ;;  %p198_p4 = scmp.eq.s32.totalorder %s697_s29, 1 }
   0xa   : > { %s1135_s10 = scalar_select %p179_p1, %s1047_s26, %s181_s8  }
   0xb   : > { %p1137_p5 = por %p192_p2, %p191_p0  ;;  %p1141_p6 = por %p198_p4, %p197_p3 }
   0xc   : > { %p698_p7 = scmp.ge.s32.totalorder %s1051_s27, 1  ;;  %p205_p8 = scmp.lt.s32.totalorder %s1051_s27, 3 }
   0xd   : > { %p859_p9 = scmp.eq.s32.totalorder %s1120_s28, 0  ;;  %s222_s16 = sshll.u32 %s1223_s3, 4  ;;  %s223_s16 = int_to_ptr.hbm [resolvable:$true] %s222_s16 }
   0xe   : > { %p1148_p10 = pnand %p698_p7, %p205_p8  ;;  %s1053_s17 = smov [#allocation2]  }
   0xf   : > { %s224_s18 = sshll.u32 %s1053_s17, 4  ;;  %s239_s21 = sshll.u32 %s1225_s5, 4  ;;  %s225_s18 = int_to_ptr.vmem [resolvable:$true] %s224_s18  ;;  %s240_s21 = int_to_ptr.hbm [resolvable:$true] %s239_s21 }
  0x10   : > { %p848_p11 = pneg %p1148_p10  ;;  %s1054_s22 = smov 64  }
  0x11   : > { %s1055_s23 = smov 4   ;;  %s1056_s29 = smov [#allocation5]  }
  0x12   : > { %p849_p12 = pnand %p859_p9, %p848_p11  ;;  %s241_s8 = sshll.u32 %s1056_s29, 4  ;;  %s242_s8 = int_to_ptr.vmem [resolvable:$true] %s241_s8 }
  0x13   : > { %269 = sbr.rel (%p1148_p10) target bundleno = 736 (0x2e0), region = 48 }
  0x14   : > { %851 = dma.hbm_to_vmem [thread:$0]  (!%p849_p12), %s223_s16, 1024, %s225_s18, [#allocation3], %s1054_s22, %s1054_s22, %s1055_s23  }
  0x15   : > { %854 = dma.hbm_to_vmem [thread:$0]  (!%p849_p12), %s240_s21, 1024, %s242_s8, [#allocation6], %s1054_s22, %s1054_s22, %s1055_s23  }
  0x18   : > { %1026 = dma.done.wait (%p859_p9), [#allocation3], 1024  }
  0x19   : > { %1028 = vsyncadd (%p859_p9), [#allocation3], 4294966272 }
  0x1a   : > { %1030 = dma.done.wait (%p859_p9), [#allocation6], 1024  }
  0x1b   : > { %1032 = vsyncadd (%p859_p9), [#allocation6], 4294966272  ;;  %s706_s9 = sshll.u32 %s1120_s28, 2  ;;  %v793_v0 = vld [vmem:[%s1221_s1] sm:$0xff]  ;;  %v801_v2 = vld [vmem:[#allocation2 + $0x38] sm:$0xff]  ;;  %vm341_vm0 = vcmask 130048  }
  0x1c   : > { %p308_p13 = scmp.lt.s32.totalorder %s706_s9, 7  ;;  %355 = vmatpush.bf16.msra.mxu0 %v793_v0  ;;  %441 = vmatpush.bf16.msra.mxu1 %v801_v2  ;;  %v800_v3 = vld [vmem:[#allocation2 + $0x30] sm:$0xff]  ;;  %v799_v4 = vld [vmem:[#allocation2 + $0x28] sm:$0xff]  ;;  %v798_v5 = vld [vmem:[#allocation2 + $0x20] sm:$0xff]  ;;  %s304_s8 = sand.u32 1, %s1043_s25  }
  0x1d   : > { %822 = vmatpush.bf16.msra.mxu3 %v801_v2  ;;  %v797_v7 = vld [vmem:[#allocation2 + $0x18] sm:$0xff]  ;;  %v796_v8 = vld [vmem:[#allocation2 + $0x10] sm:$0xff]  ;;  %v795_v9 = vld [vmem:[#allocation2 + $0x8] sm:$0xff]  ;;  %s810_s15 = sshll.u32 %s1120_s28, 4  ;;  %s598_s20 = scalar_lea.sflag [#allocation4], %s304_s8 }
  0x1e   : > { %s1236_s9 = smov (!%p308_p13, %s706_s9), 7  ;;  %v794_v10 = vld [vmem:[#allocation2] sm:$0xff]  ;;  %v809_v11 = vld [vmem:[#allocation5 + $0x38] sm:$0xff]  ;;  %v808_v13 = vld [vmem:[#allocation5 + $0x30] sm:$0xff]  ;;  %s609_s17 = scalar_lea.hbm %s1227_s7, %s810_s15 }
  0x1f   : > { %s707_s14 = sshll.u32 %s1236_s9, 2  ;;  %830 = vmatpush.bf16.msra.mxu2 %v809_v11  ;;  %v902_v14 = vld [vmem:[%s1222_s2] ss:$0 sm:$0xff]  ;;  %v807_v15 = vld [vmem:[#allocation5 + $0x28] sm:$0xff]  ;;  %v805_v30 = vld [vmem:[#allocation5 + $0x18] sm:$0xff]  ;;  %s705_s9 = sshll.u32 %s304_s8, 4 }
  0x20   : > { %s311_s16 = scalar_lea.vmem %s1220_s0, %s707_s14  ;;  %442 = vmatpush.bf16.msra.mxu1 %v800_v3  ;;  %534 = vmatpush.bf16.msrb.mxu0 %v809_v11  ;;  %v806_v19 = vld [vmem:[#allocation5 + $0x20] sm:$0xff]  ;;  %v804_v31 = vld [vmem:[#allocation5 + $0x10] sm:$0xff]  ;;  %v803_v32 = vld [vmem:[#allocation5 + $0x8] sm:$0xff]  ;;  %s306_s14 = scalar_lea.vmem [#allocation7], %s705_s9 }
  0x21   : > { %v791_v1 = vld [vmem:[%s311_s16] sm:$0xff]  ;;  %823 = vmatpush.bf16.msra.mxu3 %v800_v3  ;;  %v792_v6 = vld [vmem:[%s311_s16 + $0x8] sm:$0xff]  ;;  %s610_s18 = sshll.u32 %s306_s14, 4  ;;  %s612_s19 = sshll.u32 %s609_s17, 4  ;;  %s611_s18 = int_to_ptr.vmem [resolvable:$true] %s610_s18  ;;  %s613_s19 = int_to_ptr.hbm [resolvable:$true] %s612_s19 }
  0x22   : > { %720 = vmatmul.msk.bf16.vlgmr.msra.gmra.mxu0 %vm341_vm0, %v791_v1  ;;  %v802_v33 = vld [vmem:[#allocation5] sm:$0xff]  ;;  %s995_s21 = sshra.s32 %s613_s19, 4  ;;  %s1001_s29 = scalar_lea.hbm %s1227_s7, 32  ;;  %s996_s21 = int_to_ptr.hbm [resolvable:$true] %s995_s21 }
  0x23   : > { %831 = vmatpush.bf16.msra.mxu2 %v808_v13  ;;  %v903_v35 = vld [vmem:[%s1224_s4] ss:$0 sm:$0xff]  ;;  %s997_s28 = scalar_lea.hbm %s996_s21, 16  ;;  %p1002_p3 = scmp.lt.s32.totalorder %s996_s21, %s1227_s7 }
  0x24   : > { %443 = vmatpush.bf16.msra.mxu1 %v799_v4  ;;  %535 = vmatpush.bf16.msrb.mxu0 %v808_v13  ;;  %v904_v49 = vld [vmem:[%s1226_s6] ss:$0 sm:$0xff]  ;;  %p998_p0 = scmp.ne.s32.totalorder %s996_s21, %s997_s28  ;;  %p1003_p4 = scmp.lt.s32.totalorder %s1001_s29, %s997_s28 }
  0x25   : > { %824 = vmatpush.bf16.msra.mxu3 %v799_v4 }
  0x26   : > { %p999_p1 = pnand %p998_p0, %p1137_p5  ;;  %p1004_p7 = por %p1003_p4, %p1002_p3 }
  0x27   : > { %832 = vmatpush.bf16.msra.mxu2 %v807_v15 }
  0x28   : > { %444 = vmatpush.bf16.msra.mxu1 %v798_v5  ;;  %536 = vmatpush.bf16.msrb.mxu0 %v807_v15  ;;  %p1000_p2 = pneg %p999_p1 }
  0x29   : > { %825 = vmatpush.bf16.msra.mxu3 %v798_v5 }
  0x2a   : > { %p1005_p8 = pnand %p1004_p7, %p1000_p2 }
  0x2b   : > { %833 = vmatpush.bf16.msra.mxu2 %v806_v19 }
  0x2c   : > { %445 = vmatpush.bf16.msra.mxu1 %v797_v7  ;;  %537 = vmatpush.bf16.msrb.mxu0 %v806_v19 }
  0x2d   : > { %826 = vmatpush.bf16.msra.mxu3 %v797_v7 }
  0x2f   : > { %834 = vmatpush.bf16.msra.mxu2 %v805_v30 }
  0x30   : > { %446 = vmatpush.bf16.msra.mxu1 %v796_v8  ;;  %538 = vmatpush.bf16.msrb.mxu0 %v805_v30 }
  0x31   : > { %827 = vmatpush.bf16.msra.mxu3 %v796_v8 }
  0x32   : > { %721 = vmatmul.msk.bf16.gmra.mxu0 %vm341_vm0, %v792_v6 }
  0x33   : > { %835 = vmatpush.bf16.msra.mxu2 %v804_v31 }
  0x34   : > { %447 = vmatpush.bf16.msra.mxu1 %v795_v9  ;;  %539 = vmatpush.bf16.msrb.mxu0 %v804_v31 }
  0x35   : > { %828 = vmatpush.bf16.msra.mxu3 %v795_v9 }
  0x37   : > { %836 = vmatpush.bf16.msra.mxu2 %v803_v32 }
  0x38   : > { %448 = vmatpush.bf16.msra.mxu1 %v794_v10  ;;  %540 = vmatpush.bf16.msrb.mxu0 %v803_v32 }
  0x39   : > { %829 = vmatpush.bf16.msra.mxu3 %v794_v10 }
  0x3b   : > { %837 = vmatpush.bf16.msra.mxu2 %v802_v33 }
  0x3c   : > { %541 = vmatpush.bf16.msrb.mxu0 %v802_v33 }
  0x9f   : > { %v357_v12 = vpop.f32.mrf.mxu0 }
  0xa0   : > { %v358_v16 = vadd.f32 %v902_v14, %v357_v12 }
  0xa2   : > { %v367_v20 = vmax.f32 %v358_v16, 0.0 }
  0xa7   : > { %v359_v17 = vpop.f32.mrf.mxu0 }
  0xa8   : > { %v360_v18 = vadd.f32 %v902_v14, %v359_v17 }
  0xaa   : > { %v368_v21 = vmax.f32 %v360_v18, 0.0 }
  0xac   : > { %v371_v22 = vpack.c.bf16 %v368_v21, %v367_v20 }
  0xae   : > { %449 = vmatmul.bf16.vlgmr.msra.gmra.mxu1 %v371_v22 }
  0xaf   : > { %v362_v23 = vpop.f32.mrf.mxu0 }
  0xb0   : > { %v363_v24 = vadd.f32 %v902_v14, %v362_v23 }
  0xb2   : > { %v369_v27 = vmax.f32 %v363_v24, 0.0 }
  0xb7   : > { %v364_v25 = vpop.f32.mrf.mxu0 }
  0xb8   : > { %v365_v26 = vadd.f32 %v902_v14, %v364_v25 }
  0xba   : > { %v370_v28 = vmax.f32 %v365_v26, 0.0 }
  0xbc   : > { %v372_v29 = vpack.c.bf16 %v370_v28, %v369_v27 }
  0xbe   : > { %454 = vmatmul.bf16.vlgmr.msra.gmra.mxu3 %v372_v29 }
 0x12b   : > { %v450_v34 = vpop.f32.mrf.mxu1 }
 0x12c   : > { %v451_v36 = vadd.f32 %v903_v35, %v450_v34 }
 0x12e   : > { %v460_v39 = vmax.f32 %v451_v36, 0.0 }
 0x133   : > { %v452_v37 = vpop.f32.mrf.mxu1 }
 0x134   : > { %v453_v38 = vadd.f32 %v903_v35, %v452_v37 }
 0x136   : > { %v461_v40 = vmax.f32 %v453_v38, 0.0 }
 0x138   : > { %v464_v41 = vpack.c.bf16 %v461_v40, %v460_v39 }
 0x13a   : > { %542 = vmatmul.bf16.vlgmr.msrb.gmra.mxu0 %v464_v41 }
 0x141   : > { %v455_v42 = vpop.f32.mrf.mxu3 }
 0x142   : > { %v456_v43 = vadd.f32 %v903_v35, %v455_v42 }
 0x144   : > { %v462_v46 = vmax.f32 %v456_v43, 0.0 }
 0x149   : > { %v457_v44 = vpop.f32.mrf.mxu3 }
 0x14a   : > { %v458_v45 = vadd.f32 %v903_v35, %v457_v44 }
 0x14c   : > { %v463_v47 = vmax.f32 %v458_v45, 0.0 }
 0x14e   : > { %v465_v48 = vpack.c.bf16 %v463_v47, %v462_v46 }
 0x150   : > { %547 = vmatmul.bf16.vlgmr.msra.gmra.mxu2 %v465_v48 }
 0x1b7   : > { %v543_v50 = vpop.f32.mrf.mxu0 }
 0x1b8   : > { %v544_v51 = vadd.f32 %v904_v49, %v543_v50 }
 0x1ba   : > { %553 = vmax.xlane.f32.xlu0 %v544_v51 }
 0x1bf   : > { %v545_v52 = vpop.f32.mrf.mxu0 }
 0x1c0   : > { %v546_v53 = vadd.f32 %v904_v49, %v545_v52 }
 0x1c2   : > { %555 = vmax.xlane.f32.xlu0 %v546_v53 }
 0x1d3   : > { %v548_v54 = vpop.f32.mrf.mxu2 }
 0x1d4   : > { %v549_v55 = vadd.f32 %v904_v49, %v548_v54 }
 0x1d6   : > { %557 = vmax.xlane.f32.xlu1 %v549_v55 }
 0x1db   : > { %v550_v56 = vpop.f32.mrf.mxu2 }
 0x1dc   : > { %v551_v57 = vadd.f32 %v904_v49, %v550_v56 }
 0x1de   : > { %559 = vmax.xlane.f32.xlu1 %v551_v57 }
 0x22d   : > { %v554_v58 = vpop.xlane.xlu0 %553 }
 0x22e   : > { %v561_v59 = vsub.f32 %v544_v51, %v554_v58 }
 0x230   : > { %v565_v60 = vmul.f32 1.442695, %v561_v59 }
 0x232   : > { %905 = vpow2.f32 %v565_v60 }
 0x235   : > { %v556_v61 = vpop.xlane.xlu0 %555 }
 0x236   : > { %v562_v62 = vsub.f32 %v546_v53, %v556_v61 }
 0x238   : > { %v906_v63 = vpop.eup %905  ;;  %v567_v0 = vmul.f32 1.442695, %v562_v62 }
 0x239   : > { %573 = vadd.xlane.f32.xlu2 %v906_v63 }
 0x23a   : > { %907 = vpow2.f32 %v567_v0 }
 0x240   : > { %v908_v1 = vpop.eup %907 }
 0x241   : > { %575 = vadd.xlane.f32.xlu2 %v908_v1 }
 0x249   : > { %v558_v2 = vpop.xlane.xlu1 %557 }
 0x24a   : > { %v563_v3 = vsub.f32 %v549_v55, %v558_v2 }
 0x24c   : > { %v569_v4 = vmul.f32 1.442695, %v563_v3 }
 0x24e   : > { %909 = vpow2.f32 %v569_v4 }
 0x251   : > { %v560_v5 = vpop.xlane.xlu1 %559 }
 0x252   : > { %v564_v6 = vsub.f32 %v551_v57, %v560_v5 }
 0x254   : > { %v910_v7 = vpop.eup %909  ;;  %v571_v8 = vmul.f32 1.442695, %v564_v6 }
 0x255   : > { %577 = vadd.xlane.f32.xlu0 %v910_v7 }
 0x256   : > { %911 = vpow2.f32 %v571_v8 }
 0x25c   : > { %v912_v9 = vpop.eup %911 }
 0x25d   : > { %579 = vadd.xlane.f32.xlu1 %v912_v9 }
 0x2ac   : > { %v574_v10 = vpop.xlane.xlu2 %573 }
 0x2ad   : > { %913 = vrcp.f32 %v574_v10 }
 0x2b3   : > { %v914_v12 = vpop.eup %913 }
 0x2b4   : > { %v576_v11 = vpop.xlane.xlu2 %575  ;;  %v585_v14 = vmul.f32 %v914_v12, %v906_v63 }
 0x2b5   : > { %915 = vrcp.f32 %v576_v11 }
 0x2bb   : > { %v916_v13 = vpop.eup %915 }
 0x2bc   : > { %v586_v15 = vmul.f32 %v916_v13, %v908_v1 }
 0x2be   : > { %v814_v16 = vpack.c.bf16 %v586_v15, %v585_v14 }
 0x2c0   : > { %815 = vst [vmem:[%s306_s14] sm:$0xff] %v814_v16  }
 0x2c8   : > { %v578_v17 = vpop.xlane.xlu0 %577 }
 0x2c9   : > { %917 = vrcp.f32 %v578_v17 }
 0x2cf   : > { %v918_v19 = vpop.eup %917 }
 0x2d0   : > { %v580_v18 = vpop.xlane.xlu1 %579  ;;  %v587_v21 = vmul.f32 %v918_v19, %v910_v7 }
 0x2d1   : > { %919 = vrcp.f32 %v580_v18 }
 0x2d7   : > { %v920_v20 = vpop.eup %919 }
 0x2d8   : > { %v588_v22 = vmul.f32 %v920_v20, %v912_v9 }
 0x2da   : > { %v819_v23 = vpack.c.bf16 %v588_v22, %v587_v21 }
 0x2dc   : > { %821 = vst [vmem:[%s306_s14 + $0x8] sm:$0xff] %v819_v23  }
 0x2dd   : > { %1008 = shalt.err (!%p1005_p8)
}
 0x2de   : > { %s1057_s8 = smov 64   ;;  %s1058_s14 = smov 4  }
 0x2df   : > { %846 = dma.vmem_to_hbm [thread:$0]  (%p1137_p5), %s611_s18, 256, %s613_s19, %s598_s20, %s1057_s8, %s1057_s8, %s1058_s14  }
 0x2e0 PF: > { %p863_p9 = scmp.ge.s32.totalorder %s1051_s27, 2  ;;  %s627_s13 = sand.u32 1, %s1039_s24  }
 0x2e1   : > { %s628_s16 = scalar_lea.sflag [#allocation4], %s627_s13 }
 0x2e2   : > { %p856_p10 = pnand %p863_p9, %p1141_p6 }
 0x2e4   : > { %p857_p11 = pneg %p856_p10 }
 0x2e6   : > { %1034 = dma.done.wait (%p857_p11), %s628_s16, 256  }
 0x2e7   : > { %1036 = vsyncadd (%p857_p11), %s628_s16, 4294967040  ;;  %p19_p12 = scmp.ge.s32.totalorder %s1124_s30, 4   ;;  %s1231_s24 = smov %s1043_s25 }
 0x2e8   : > { %s1232_s25 = smov %s1047_s26  ;;  %s1233_s26 = smov %s1135_s10 }
 0x2e9   : > { %s1234_s27 = smov %s1124_s30  ;;  %21 = sbr.rel (!%p19_p12) target bundleno = 5 (0x5), region = 92 }
 0x2ee   :  { %634 = vsyncpa [#allocation3], 1 }
 0x2ef   :  { %636 = vsyncpa [#allocation3 + $0x1], 1 }
 0x2f0   :  { %637 = vsyncpa [#allocation6], 1 }
 0x2f1   :  { %638 = vsyncpa [#allocation4], 1 }
 0x2f2   :  { %640 = vsyncpa [#allocation4 + $0x1], 1 }

</bundles_post_ra>
